<compile_context>
chip_gen: v7x
topology: tpu7x:2x2x1
jax: 0.10.0
libtpu: 0.0.40
codegen_flags: <defaults>
</compile_context>

<pallas_src>
import math

import jax
import jax.numpy as jnp
from jax import lax
from jax.experimental import pallas as pl
from jax.experimental.pallas import tpu as pltpu


def _round_up(x, m):
    return ((x + m - 1) // m) * m


def _conv1x1_kernel(x_ref, w_ref, b_ref, o_ref):
    # x_ref: (Cin, T)  pixel tile, pixels on lanes
    # w_ref: (Cin, D)  full weight (transposed layout -> lanes = D)
    # b_ref: (D, 1)    bias column
    # o_ref: (D, T)    output tile, pixels on lanes -> unmasked lane-dense store
    acc = lax.dot_general(
        w_ref[...], x_ref[...],
        dimension_numbers=(((0,), (0,)), ((), ())),
        preferred_element_type=jnp.float32,
    )  # (D, T) f32 accumulate on the MXU
    o_ref[...] = (acc + b_ref[...]).astype(o_ref.dtype)


def _vmem_capacity_bytes():
    try:
        cap = getattr(pltpu.get_tpu_info(), "vmem_capacity_bytes", None)
        if cap:
            return int(cap)
    except Exception:
        pass
    return 64 * 1024 * 1024  # conservative fallback (v7x per-TC VMEM)


def _derive_tile_and_vmem(hw, cin, d, in_itemsize, out_itemsize):
    """Pick the pixel-tile width (multiple of 128) and vmem_limit_bytes from
    the physically padded VMEM footprint of the pipeline buffers."""
    del cin  # always sublane-padded to 8 below
    cap = _vmem_capacity_bytes()
    budget = (cap * 3) // 4           # ~48 MiB on v7x, ~96 MiB on v5e/v6e

    cin_pad = 8                       # sublane padding: 3 -> 8
    d_pad8 = _round_up(d, 8)
    d_pad128 = _round_up(d, 128)

    # Grid-invariant buffers, counted as double-buffered to be safe:
    #   weight (Cin, D): sublanes 3->8, lanes to 128-multiple of D
    #   bias   (D, 1):   lanes 1->128
    fixed = 2 * (cin_pad * d_pad128 * in_itemsize
                 + d_pad8 * 128 * in_itemsize)

    # Cost of 128 lanes of pixel tile (input + output, double buffered).
    per_128 = 2 * 128 * (cin_pad * in_itemsize + d_pad8 * out_itemsize)

    avail = max(budget - fixed, per_128)
    tile = max(128, (avail // per_128) * 128)
    tile = min(tile, 8192)                    # diminishing returns past ~8K lanes
    tile = min(tile, _round_up(hw, 128))      # never larger than the image

    # Prefer a multiple-of-128 divisor of HW (no ragged last block) if one
    # exists within 2x of the budget-limited tile; otherwise let Pallas mask.
    t = tile
    while t >= max(128, tile // 2):
        if hw % t == 0:
            tile = t
            break
        t -= 128

    need = fixed + (tile // 128) * per_128
    vmem_limit = min(cap - (2 << 20), int(need * 1.25) + (4 << 20))
    return tile, vmem_limit


def local_embedding_forward(x_nchw, weight_oc, bias_o, *, out_dtype=None):
    """1x1 conv (LocalEmbedding.forward).

    x_nchw:    (B, 3, H, W)
    weight_oc: (d_model, 3)  -- conv weight with its 1x1 spatial dims squeezed
    bias_o:    (d_model,)
    out_dtype: optional output dtype (e.g. jnp.bfloat16 for a bf16 consumer;
               halves the dominant HBM write).  Defaults to x_nchw.dtype.
    returns:   (B, d_model, H, W)
    """
    B, Cin, H, W = x_nchw.shape
    assert Cin == 3
    D = weight_oc.shape[0]
    HW = H * W
    out_dtype = x_nchw.dtype if out_dtype is None else out_dtype

    x = x_nchw.reshape(B, Cin, HW)   # free reshape, stays in native NCHW
    w_cd = weight_oc.T               # (Cin, D): lane axis = D, tiny in HBM
    b_col = bias_o.reshape(D, 1)

    in_itemsize = jnp.dtype(x_nchw.dtype).itemsize
    out_itemsize = jnp.dtype(out_dtype).itemsize
    tile, vmem_limit = _derive_tile_and_vmem(HW, Cin, D, in_itemsize, out_itemsize)

    num_tiles = pl.cdiv(HW, tile)
    grid = (num_tiles, B)            # pixel-tile axis first (megacore balance)

    cost = pl.CostEstimate(
        flops=2 * B * HW * Cin * D,
        transcendentals=0,
        bytes_accessed=(B * Cin * HW * in_itemsize
                        + B * D * HW * out_itemsize
                        + (D * Cin + D) * in_itemsize),
    )

    out = pl.pallas_call(
        _conv1x1_kernel,
        out_shape=jax.ShapeDtypeStruct((B, D, HW), out_dtype),
        grid_spec=pltpu.PrefetchScalarGridSpec(
            num_scalar_prefetch=0,
            grid=grid,
            in_specs=[
                # pixel tile of one image: kernel sees (Cin, tile)
                pl.BlockSpec((None, Cin, tile), lambda p, b: (b, 0, p)),
                # full weight (Cin, D), grid-invariant
                pl.BlockSpec((Cin, D), lambda p, b: (0, 0)),
                # full bias column (D, 1), grid-invariant
                pl.BlockSpec((D, 1), lambda p, b: (0, 0)),
            ],
            out_specs=pl.BlockSpec((None, D, tile), lambda p, b: (b, 0, p)),
        ),
        compiler_params=pltpu.CompilerParams(
            dimension_semantics=("parallel", "parallel"),
            vmem_limit_bytes=vmem_limit,
        ),
        cost_estimate=cost,
    )(x, w_cd, b_col)

    # (B, D, HW) is already flattened NCHW -> a free reshape, no slicing.
    return out.reshape(B, D, H, W)


def _reference(x_nchw, weight_oc, bias_o):
    y = jnp.einsum("bchw,oc->bohw", x_nchw, weight_oc)
    return y + bias_o[None, :, None, None]


if __name__ == "__main__":
    key = jax.random.PRNGKey(0)
    kx, kw, kb = jax.random.split(key, 3)

    B, Cin, H, W = 2, 3, 16, 16
    d_model = 32

    x = jax.random.normal(kx, (B, Cin, H, W), dtype=jnp.float32)

    # Deterministic init mimicking nn.Conv2d defaults (fan_in = 3*1*1).
    fan_in = Cin * 1 * 1
    bound = math.sqrt(1.0 / fan_in)
    weight = jax.random.uniform(kw, (d_model, Cin), jnp.float32,
                                minval=-bound, maxval=bound)
    bias = jax.random.uniform(kb, (d_model,), jnp.float32,
                              minval=-bound, maxval=bound)

    out = jax.block_until_ready(local_embedding_forward(x, weight, bias))

    ref = _reference(x, weight, bias)
    assert out.shape == (B, d_model, H, W)
    assert jnp.allclose(out, ref, atol=1e-5, rtol=1e-5)

    print("KERNEL_OK")
</pallas_src>

<mosaic_0001>
module attributes {stable_mosaic.version = 11 : i64} {
  func.func @_conv1x1_kernel(%arg0: i32, %arg1: i32, %arg2: memref<1x3x256xf32, #tpu.memory_space<vmem>>, %arg3: memref<3x32xf32, #tpu.memory_space<vmem>>, %arg4: memref<32x1xf32, #tpu.memory_space<vmem>>, %arg5: memref<1x32x256xf32, #tpu.memory_space<vmem>>) attributes {dimension_semantics = [#tpu.dimension_semantics<parallel>, #tpu.dimension_semantics<parallel>], iteration_bounds = array<i64: 1, 2>, scalar_prefetch = 0 : i64, scratch_operands = 0 : i64, tpu.core_type = #tpu.core_type<tc>, window_params = [{transform_indices = @transform_0, window_bounds = array<i64: 1, 3, 256>}, {pipeline_mode = #tpu.pipeline_mode<synchronous>, transform_indices = @transform_1, window_bounds = array<i64: 3, 32>}, {pipeline_mode = #tpu.pipeline_mode<synchronous>, transform_indices = @transform_2, window_bounds = array<i64: 32, 1>}, {transform_indices = @transform_3, window_bounds = array<i64: 1, 32, 256>}]} {
    %c0 = arith.constant 0 : index
    %c0_0 = arith.constant 0 : index
    %0 = vector.load %arg3[%c0, %c0_0] : memref<3x32xf32, #tpu.memory_space<vmem>>, vector<3x32xf32>
    %c0_1 = arith.constant 0 : index
    %c0_2 = arith.constant 0 : index
    %c0_3 = arith.constant 0 : index
    %1 = vector.load %arg2[%c0_1, %c0_2, %c0_3] : memref<1x3x256xf32, #tpu.memory_space<vmem>>, vector<1x3x256xf32>
    %2 = vector.shape_cast %1 : vector<1x3x256xf32> to vector<3x256xf32>
    %cst = arith.constant dense<0.000000e+00> : vector<32x256xf32>
    %3 = tpu.matmul %0, %2, %cst {dimension_numbers = #tpu.dot_dimension_numbers<[0], [0], [1], [1], [0, 1, 1, 1], [], []>} : vector<3x32xf32>, vector<3x256xf32>, vector<32x256xf32> -> vector<32x256xf32>
    %c0_4 = arith.constant 0 : index
    %c0_5 = arith.constant 0 : index
    %4 = vector.load %arg4[%c0_4, %c0_5] : memref<32x1xf32, #tpu.memory_space<vmem>>, vector<32x1xf32>
    %5 = vector.broadcast %4 : vector<32x1xf32> to vector<32x256xf32>
    %6 = arith.addf %3, %5 : vector<32x256xf32>
    %c0_6 = arith.constant 0 : index
    %c0_7 = arith.constant 0 : index
    %c0_8 = arith.constant 0 : index
    %7 = vector.load %arg5[%c0_6, %c0_7, %c0_8] : memref<1x32x256xf32, #tpu.memory_space<vmem>>, vector<1x32x256xf32>
    %8 = vector.shape_cast %7 : vector<1x32x256xf32> to vector<32x256xf32>
    %9 = vector.shape_cast %6 : vector<32x256xf32> to vector<1x32x256xf32>
    tpu.vector_store %arg5[%c0_6, %c0_7, %c0_8], %9 {strides = array<i32>} : memref<1x32x256xf32, #tpu.memory_space<vmem>>, vector<1x32x256xf32>,
    return
  }
  func.func @transform_0(%arg0: i32, %arg1: i32) -> (i32, i32, i32) {
    %c0_i32 = arith.constant 0 : i32
    %c0_i32_0 = arith.constant 0 : i32
    return %arg1, %c0_i32, %arg0 : i32, i32, i32
  }
  func.func @transform_1(%arg0: i32, %arg1: i32) -> (i32, i32) {
    %c0_i32 = arith.constant 0 : i32
    %c0_i32_0 = arith.constant 0 : i32
    %c0_i32_1 = arith.constant 0 : i32
    return %c0_i32, %c0_i32_0 : i32, i32
  }
  func.func @transform_2(%arg0: i32, %arg1: i32) -> (i32, i32) {
    %c0_i32 = arith.constant 0 : i32
    %c0_i32_0 = arith.constant 0 : i32
    %c0_i32_1 = arith.constant 0 : i32
    return %c0_i32, %c0_i32_0 : i32, i32
  }
  func.func @transform_3(%arg0: i32, %arg1: i32) -> (i32, i32, i32) {
    %c0_i32 = arith.constant 0 : i32
    %c0_i32_0 = arith.constant 0 : i32
    return %arg1, %c0_i32, %arg0 : i32, i32, i32
  }
}

</mosaic_0001>

<bundles_post_ra>
// kernel: tpu_custom_call.1
= control target key start
LH: loop header
LB: loop body
LE: loop exit
PB: predicated region body
PF: predicated region fallthrough
CT: control target
= control target key end

     0   :  { %8 = vsyncpa [#allocation3], 0  ;;  %s794_s0 = inlined_call_operand.vmem [shape: f32[2,3,256], index: 0, kind: input, shape index: {}]   ;;  %s795_s1 = inlined_call_operand.vmem [shape: f32[3,32], index: 1, kind: input, shape index: {}]   ;;  %s796_s2 = inlined_call_operand.vmem [shape: f32[32,1], index: 2, kind: input, shape index: {}]   ;;  %s797_s3 = inlined_call_operand.hbm [shape: f32[2,32,256], index: 3, kind: output, shape index: {}]  }
   0x1   :  { %10 = vsyncpa [#allocation3 + $0x1], 0  ;;  %s660_s12 = smov 0   ;;  %s662_s13 = smov 0  }
   0x2   :  { %s664_s14 = smov 0   ;;  %s666_s15 = smov 0  }
   0x3   :  { %s668_s16 = smov 0   ;;  %s670_s17 = smov 0  }
   0x4 LB: > { %s470_s18 = sadd.s32 4294967295, %s633_s17   ;;  %s471_s19 = sadd.s32 4294967294, %s633_s17   ;;  %s633_s17 = sphi %s670_s17, %s16_s17   ;;  %s629_s16 = sphi %s668_s16, %s804_s16   ;;  %s625_s15 = sphi %s666_s15, %s803_s15   ;;  %s621_s14 = sphi %s664_s14, %s802_s14   ;;  %s617_s13 = sphi %s662_s13, %s801_s13   ;;  %s613_s12 = sphi %s660_s12, %s800_s12  }
   0x5   : > { %s25_s20 = sadd.s32 1, %s629_s16  ;;  %s107_s21 = sadd.s32 1, %s621_s14 }
   0x6   : > { %p26_p0 = scmp.ge.s32.totalorder %s25_s20, 2  ;;  %p117_p1 = scmp.ne.s32.totalorder %s621_s14, %s617_s13 }
   0x7   : > { %p118_p2 = scmp.eq.s32.totalorder %s470_s18, 1  ;;  %p123_p3 = scmp.ne.s32.totalorder %s617_s13, %s613_s12 }
   0x8   : > { %s806_s20 = smov (%p26_p0, %s25_s20), 0  ;;  %p124_p5 = scmp.eq.s32.totalorder %s471_s19, 1 }
   0x9   : > { %p700_p4 = por %p118_p2, %p117_p1  ;;  %s102_s23 = ssub.s32 %s629_s16, %s806_s20 }
   0xa   : > { %p474_p6 = scmp.ge.s32.totalorder %s633_s17, 1  ;;  %p105_p7 = scmp.eq.s32.totalorder %s102_s23, 0 }
   0xb   : > { %p707_p8 = por %p124_p5, %p123_p3  ;;  %p161_p9 = scmp.lt.s32.totalorder %s633_s17, 3 }
   0xc   : > { %s713_s25 = scalar_select %p105_p7, %s621_s14, %s107_s21  }
   0xd   : > { %p162_p10 = pnand %p474_p6, %p161_p9 }
   0xe   : > { %v200_v0 = vld [vmem:[%s795_s1] sm:$0x7] (!%p162_p10)  ;;  %p190_p11 = scmp.lt.s32.totalorder (!%p162_p10), %s625_s15, 1  ;;  %v635_v1 = vmov (!%p162_p10), 0.0   ;;  %vm273_vm0 = vcmask (!%p162_p10), 1042432   ;;  %v203_v4 = vld [vmem:[%s796_s2 + $0x8] sm:$0xff] (!%p162_p10) }
   0xf   : > { %165 = sbr.rel (%p162_p10) target bundleno = 386 (0x182), region = 32  ;;  %226 = vxpose.xlu0.b32.start.end [1/1] (short) (narrow) (!%p162_p10), %v200_v0, 32  ;;  %342 = vmatprep.mubr.f32.mxu0 (!%p162_p10), %v635_v1  ;;  %v636_v5 = vmov (!%p162_p10), 0   ;;  %v204_v6 = vld [vmem:[%s796_s2 + $0x10] sm:$0xff] (!%p162_p10)  ;;  %v205_v7 = vld [vmem:[%s796_s2 + $0x18] sm:$0xff] (!%p162_p10)  ;;  %v202_v8 = vld [vmem:[%s796_s2] sm:$0xff] (!%p162_p10) }
  0x10   : > { %354 = vmatprep.mubr.f32.mxu1 (!%p162_p10), %v635_v1  ;;  %553 = vset.pattern.permute.xlu1 (!%p162_p10), %v636_v5  ;;  %vm260_vm1 = vcmask (!%p162_p10), 23552   ;;  %s186_s21 = sand.u32 (!%p162_p10), 1, %s617_s13   ;;  %s490_s27 = sshll.u32 (!%p162_p10), %s625_s15, 10 }
  0x11   : > { %213 = vperm.xlu1 (!%p162_p10), %553, %v203_v4   ;;  %s475_s23 = sshll.u32 (!%p162_p10), %s186_s21, 6  ;;  %s742_s4 = scalar_lea.hbm (!%p162_p10), %s797_s3, %s490_s27 }
  0x12   : > { %s188_s26 = scalar_lea.vmem (!%p162_p10), [#allocation2], %s475_s23  ;;  %s637_s6 = smov (!%p162_p10), [#allocation2]  }
  0x13   : > { %s559_s7 = sshll.u32 (!%p162_p10), %s637_s6, 4  ;;  %s560_s7 = int_to_ptr.vmem [resolvable:$false] %s559_s7 }
  0x14   : > { %s561_s8 = scalar_lea.vmem (!%p162_p10), %s560_s7, 2048 }
  0x15   : > { %218 = vperm.xlu1 (!%p162_p10), %553, %v204_v6  }
  0x16   : > { %s191_s28 = scalar_select %p190_p11, %s625_s15, 1 }
  0x17   : > { %s748_s15 = scalar_lea.sflag [#allocation3], %s186_s21 }
  0x18   : > { %s489_s29 = sshll.u32 %s191_s28, 3  ;;  %s391_s28 = sshll.u32 %s188_s26, 4  ;;  %s744_s28 = int_to_ptr.vmem [resolvable:$true] %s391_s28 }
  0x19   : > { %s197_s5 = scalar_lea.vmem %s794_s0, %s489_s29  ;;  %223 = vperm.xlu1 %553, %v205_v7   ;;  %p562_p1 = scmp.lt.s32.totalorder %s744_s28, %s560_s7 }
  0x1a   : > { %v201_v2 = vld [vmem:[%s197_s5] sm:$0x77]  ;;  %s555_s5 = scalar_lea.vmem %s744_s28, 1024 }
  0x1b   : > { %v259_v3 = vcombine.high %v201_v2, %v201_v2  ;;  %p556_p12 = scmp.ne.s32.totalorder %s744_s28, %s555_s5  ;;  %p563_p2 = scmp.lt.s32.totalorder %s561_s8, %s555_s5 }
  0x1d   : > { %478 = vmatprep.subr.msk.mxu0 %vm273_vm0, %v259_v3  ;;  %491 = vmatprep.subr.msk.mxu1 %vm273_vm0, %v259_v3  ;;  %p557_p13 = pnand %p556_p12, %p700_p4  ;;  %p564_p3 = por %p563_p2, %p562_p1 }
  0x1e   : > { %479 = vmatpush1.msk.msra.mxu0 %vm273_vm0, %v201_v2  ;;  %492 = vmatpush1.msk.msra.mxu1 %vm273_vm0, %v201_v2 }
  0x1f   : > { %p558_p0 = pneg %p557_p13 }
  0x21   : > { %p565_p5 = pnand %p564_p3, %p558_p0 }
  0x38   : > { %552 = vset.pattern.permute.xlu0 %v636_v5 }
  0x44   : > { %208 = vperm.xlu0 %552, %v202_v8  }
  0x8f   : > { %v242_v9 = vpop.trf.xlu0 }
  0x90   : > { %480 = vmatmul.mubr.msk.f32.vlgmr.msra.gmra.mrb[0].mxu0 %vm260_vm1, %v242_v9  ;;  %v214_v14 = vpop.permute.xlu1 %213 }
  0x91   : > { %348 = vmatprep.mubr.f32.mxu0 %v635_v1 }
  0x93   : > { %v243_v10 = vpop.trf.xlu0 }
  0x94   : > { %481 = vmatmul.mubr.msk.f32.gmra.mrb[2].mxu0 %vm260_vm1, %v243_v10  ;;  %v219_v22 = vpop.permute.xlu1 %218 }
  0x97   : > { %v244_v11 = vpop.trf.xlu0 }
  0x98   : > { %482 = vmatmul.mubr.msk.f32.vlgmr.msra.gmra.mrb[0].mxu1 %vm260_vm1, %v244_v11  ;;  %v224_v28 = vpop.permute.xlu1 %223 }
  0x99   : > { %360 = vmatprep.mubr.f32.mxu1 %v635_v1 }
  0x9b   : > { %v245_v12 = vpop.trf.xlu0 }
  0x9c   : > { %483 = vmatmul.mubr.msk.f32.gmra.mrb[2].mxu1 %vm260_vm1, %v245_v12 }
  0xc3   : > { %v209_v13 = vpop.permute.xlu0 %208 }
 0x163   : > { %v344_v15 = vpop.f32.mrb[0].mxu0 }
 0x164   : > { %v345_v16 = vadd.f32 %v344_v15, %v209_v13  ;;  %v346_v17 = vpop.f32.mrb[1].mxu0 }
 0x165   : > { %v347_v18 = vadd.f32 %v346_v17, %v209_v13 }
 0x166   : > { %367 = vst [vmem:[%s188_s26] sm:$0xff] %v345_v16 }
 0x167   : > { %368 = vst [vmem:[%s188_s26 + $0x8] sm:$0xff] %v347_v18  ;;  %v350_v19 = vpop.f32.mrb[2].mxu0 }
 0x168   : > { %v351_v20 = vadd.f32 %v350_v19, %v214_v14  ;;  %v352_v21 = vpop.f32.mrb[3].mxu0 }
 0x169   : > { %v353_v23 = vadd.f32 %v352_v21, %v214_v14 }
 0x16a   : > { %369 = vst [vmem:[%s188_s26 + $0x10] sm:$0xff] %v351_v20 }
 0x16b   : > { %370 = vst [vmem:[%s188_s26 + $0x18] sm:$0xff] %v353_v23  ;;  %v356_v24 = vpop.f32.mrb[0].mxu1 }
 0x16c   : > { %v357_v25 = vadd.f32 %v356_v24, %v219_v22  ;;  %v358_v26 = vpop.f32.mrb[1].mxu1 }
 0x16d   : > { %v359_v27 = vadd.f32 %v358_v26, %v219_v22 }
 0x16e   : > { %371 = vst [vmem:[%s188_s26 + $0x20] sm:$0xff] %v357_v25 }
 0x16f   : > { %372 = vst [vmem:[%s188_s26 + $0x28] sm:$0xff] %v359_v27  ;;  %v362_v29 = vpop.f32.mrb[2].mxu1 }
 0x170   : > { %v363_v30 = vadd.f32 %v362_v29, %v224_v28  ;;  %v364_v31 = vpop.f32.mrb[3].mxu1 }
 0x171   : > { %v365_v32 = vadd.f32 %v364_v31, %v224_v28 }
 0x172   : > { %373 = vst [vmem:[%s188_s26 + $0x30] sm:$0xff] %v363_v30 }
 0x173   : > { %374 = vst [vmem:[%s188_s26 + $0x38] sm:$0xff] %v365_v32 }
 0x174   : > { %568 = shalt.err (!%p565_p5)
}
 0x175   : > { %s569_s9 = scalar_lea.hbm %s742_s4, 1024  ;;  %s573_s18 = scalar_lea.hbm %s797_s3, 2048 }
 0x176   : > { %p570_p6 = scmp.ne.s32.totalorder %s742_s4, %s569_s9  ;;  %p574_p10 = scmp.lt.u32.totalorder %s742_s4, %s797_s3 }
 0x177   : > { %p575_p11 = scmp.lt.u32.totalorder %s573_s18, %s569_s9  ;;  %p577_p13 = scmp.lt.u32.totalorder %s569_s9, %s742_s4 }
 0x178   : > { %p571_p7 = pnand %p570_p6, %p700_p4 }
 0x179   : > { %p576_p12 = por %p575_p11, %p574_p10 }
 0x17a   : > { %p572_p9 = pneg %p571_p7 }
 0x17b   : > { %p578_p0 = por %p577_p13, %p576_p12 }
 0x17d   : > { %p579_p1 = pnand %p578_p0, %p572_p9 }
 0x17f   : > { %582 = shalt.err (!%p579_p1)
}
 0x180   : > { %s638_s23 = smov 256   ;;  %s639_s26 = smov 16  }
 0x181   : > { %493 = dma.vmem_to_hbm [thread:$0]  (%p700_p4), %s744_s28, 1024, %s742_s4, %s748_s15, %s638_s23, %s638_s23, %s639_s26  }
 0x182 PF: > { %p499_p2 = scmp.ge.s32.totalorder %s633_s17, 2  ;;  %s406_s27 = sand.u32 1, %s613_s12  }
 0x183   : > { %s407_s29 = scalar_lea.sflag [#allocation3], %s406_s27 }
 0x184   : > { %p496_p3 = pnand %p499_p2, %p707_p8 }
 0x186   : > { %608 = dma.done.wait (!%p496_p3), %s407_s29, 1024  }
 0x187   : > { %610 = vsyncadd (!%p496_p3), %s407_s29, 4294966272  ;;  %s16_s17 = sadd.s32 1, %s633_s17   ;;  %s800_s12 = smov %s617_s13 }
 0x188   : > { %p13_p5 = scmp.ge.s32.totalorder %s16_s17, 4   ;;  %s801_s13 = smov %s621_s14 }
 0x189   : > { %s802_s14 = smov %s713_s25  ;;  %s803_s15 = smov %s629_s16 }
 0x18a   : > { %s804_s16 = smov %s806_s20  ;;  %15 = sbr.rel (!%p13_p5) target bundleno = 4 (0x4), region = 67 }
 0x191   :  { %412 = vsyncpa [#allocation3], 1 }
 0x192   :  { %414 = vsyncpa [#allocation3 + $0x1], 1 }

</bundles_post_ra>
